<compile_context>
chip_gen: v5e
topology: v5e:2x2
jax: 0.10.0
libtpu: 0.0.40
codegen_flags: <defaults>
</compile_context>

<pallas_src>
import functools

import jax
import jax.numpy as jnp
from jax.experimental import pallas as pl
from jax.experimental.pallas import tpu as pltpu


def _bn_kernel(x_ref, w_ref, b_ref, o_ref, *, eps):
    # x_ref/o_ref: (N, CB, HW)   w_ref/b_ref: (CB, 1)
    # ---- pass 1: per-channel batch statistics (single read of x) ----
    x = x_ref[...].astype(jnp.float32)
    n, cb, hw = x.shape
    inv_m = 1.0 / float(n * hw)
    s = jnp.sum(x, axis=(0, 2), keepdims=True)          # (1, CB, 1)
    ss = jnp.sum(x * x, axis=(0, 2), keepdims=True)     # (1, CB, 1)
    mean = s * inv_m
    var = jnp.maximum(ss * inv_m - mean * mean, 0.0)    # biased (population) var
    inv_std = jax.lax.rsqrt(var + eps)                  # EUP, off the VALU slot

    # ---- fold affine into per-channel scale/shift (tiny, (1, CB, 1)) ----
    scale = w_ref[...][None, :, :].astype(jnp.float32) * inv_std
    shift = b_ref[...][None, :, :].astype(jnp.float32) - mean * scale

    # ---- pass 2: single per-element pass, re-reading x_ref ----
    o_ref[...] = (x_ref[...].astype(jnp.float32) * scale + shift).astype(o_ref.dtype)


def batchnorm2d(x_nchw, weight, bias, eps=1e-3):
    """Training-mode BatchNorm2d forward. x_nchw: (N, C, H, W); weight/bias: (C,)."""
    n, c, h, w = x_nchw.shape
    hw = h * w

    # Free view of contiguous NCHW -> (N, C, H*W); no transpose round-trip.
    x_3d = x_nchw.reshape(n, c, hw)
    w_c1 = weight.reshape(c, 1)
    b_c1 = bias.reshape(c, 1)

    # Channel-parallel grid: 2 blocks (88 channels each for C=176) so v7x's two
    # TensorCores split the work; sublane-clean since each block is a multiple of 8.
    if c % 16 == 0:
        cb = c // 2
    else:
        cb = c
    grid = (c // cb,)

    out_3d = pl.pallas_call(
        functools.partial(_bn_kernel, eps=eps),
        out_shape=jax.ShapeDtypeStruct((n, c, hw), x_nchw.dtype),
        grid=grid,
        in_specs=[
            pl.BlockSpec((n, cb, hw), lambda i: (0, i, 0)),
            pl.BlockSpec((cb, 1), lambda i: (i, 0)),
            pl.BlockSpec((cb, 1), lambda i: (i, 0)),
        ],
        out_specs=pl.BlockSpec((n, cb, hw), lambda i: (0, i, 0)),
        compiler_params=pltpu.CompilerParams(
            dimension_semantics=("parallel",)),
    )(x_3d, w_c1, b_c1)

    return out_3d.reshape(n, c, h, w)


if __name__ == "__main__":
    key = jax.random.PRNGKey(0)
    kx, kw, kb = jax.random.split(key, 3)

    # Shapes from the original module: x317 = randn(1, 176, 14, 14)
    N, C, H, W = 1, 176, 14, 14
    x = jax.random.normal(kx, (N, C, H, W), dtype=jnp.float32)
    # Deterministic non-trivial affine params to exercise the scale/shift path.
    weight = 1.0 + 0.1 * jax.random.normal(kw, (C,), dtype=jnp.float32)
    bias = 0.1 * jax.random.normal(kb, (C,), dtype=jnp.float32)

    out = batchnorm2d(x, weight, bias, eps=1e-3)
    out = jax.block_until_ready(out)

    # Pure-JAX reference: PyTorch training-mode forward (batch stats, biased var).
    mean = jnp.mean(x, axis=(0, 2, 3), keepdims=True)
    var = jnp.mean((x - mean) ** 2, axis=(0, 2, 3), keepdims=True)
    ref = (x - mean) * jax.lax.rsqrt(var + 1e-3) * weight.reshape(1, C, 1, 1) \
          + bias.reshape(1, C, 1, 1)

    assert out.shape == (N, C, H, W)
    assert jnp.max(jnp.abs(out - ref)) < 1e-4

    print("KERNEL_OK")
</pallas_src>

<mosaic_0001>
module attributes {stable_mosaic.version = 11 : i64} {
  func.func @_bn_kernel(%arg0: i32, %arg1: memref<1x88x196xf32, #tpu.memory_space<vmem>>, %arg2: memref<88x1xf32, #tpu.memory_space<vmem>>, %arg3: memref<88x1xf32, #tpu.memory_space<vmem>>, %arg4: memref<1x88x196xf32, #tpu.memory_space<vmem>>) attributes {dimension_semantics = [#tpu.dimension_semantics<parallel>], iteration_bounds = array<i64: 2>, scalar_prefetch = 0 : i64, scratch_operands = 0 : i64, tpu.core_type = #tpu.core_type<tc>, window_params = [{transform_indices = @transform_0, window_bounds = array<i64: 1, 88, 196>}, {transform_indices = @transform_1, window_bounds = array<i64: 88, 1>}, {transform_indices = @transform_2, window_bounds = array<i64: 88, 1>}, {transform_indices = @transform_3, window_bounds = array<i64: 1, 88, 196>}]} {
    %c0 = arith.constant 0 : index
    %c0_0 = arith.constant 0 : index
    %c0_1 = arith.constant 0 : index
    %0 = vector.load %arg1[%c0, %c0_0, %c0_1] : memref<1x88x196xf32, #tpu.memory_space<vmem>>, vector<1x88x196xf32>
    %cst = arith.constant dense<0.000000e+00> : vector<88xf32>
    %1 = vector.multi_reduction <add>, %0, %cst [0, 2] : vector<1x88x196xf32> to vector<88xf32>
    %2 = vector.shape_cast %1 : vector<88xf32> to vector<1x88x1xf32>
    %3 = arith.mulf %0, %0 : vector<1x88x196xf32>
    %cst_2 = arith.constant dense<0.000000e+00> : vector<88xf32>
    %4 = vector.multi_reduction <add>, %3, %cst_2 [0, 2] : vector<1x88x196xf32> to vector<88xf32>
    %5 = vector.shape_cast %4 : vector<88xf32> to vector<1x88x1xf32>
    %cst_3 = arith.constant 0.00510204071 : f32
    %6 = vector.broadcast %cst_3 : f32 to vector<1x88x1xf32>
    %7 = arith.mulf %2, %6 : vector<1x88x1xf32>
    %cst_4 = arith.constant 0.00510204071 : f32
    %8 = vector.broadcast %cst_4 : f32 to vector<1x88x1xf32>
    %9 = arith.mulf %5, %8 : vector<1x88x1xf32>
    %10 = arith.mulf %7, %7 : vector<1x88x1xf32>
    %11 = arith.subf %9, %10 : vector<1x88x1xf32>
    %cst_5 = arith.constant 0.000000e+00 : f32
    %12 = vector.broadcast %cst_5 : f32 to vector<1x88x1xf32>
    %13 = arith.maximumf %11, %12 : vector<1x88x1xf32>
    %cst_6 = arith.constant 1.000000e-03 : f32
    %14 = vector.broadcast %cst_6 : f32 to vector<1x88x1xf32>
    %15 = arith.addf %13, %14 : vector<1x88x1xf32>
    %16 = math.rsqrt %15 : vector<1x88x1xf32>
    %c0_7 = arith.constant 0 : index
    %c0_8 = arith.constant 0 : index
    %17 = vector.load %arg2[%c0_7, %c0_8] : memref<88x1xf32, #tpu.memory_space<vmem>>, vector<88x1xf32>
    %18 = vector.shape_cast %17 : vector<88x1xf32> to vector<1x88x1xf32>
    %19 = arith.mulf %18, %16 : vector<1x88x1xf32>
    %c0_9 = arith.constant 0 : index
    %c0_10 = arith.constant 0 : index
    %20 = vector.load %arg3[%c0_9, %c0_10] : memref<88x1xf32, #tpu.memory_space<vmem>>, vector<88x1xf32>
    %21 = vector.shape_cast %20 : vector<88x1xf32> to vector<1x88x1xf32>
    %22 = arith.mulf %7, %19 : vector<1x88x1xf32>
    %23 = arith.subf %21, %22 : vector<1x88x1xf32>
    %c0_11 = arith.constant 0 : index
    %c0_12 = arith.constant 0 : index
    %c0_13 = arith.constant 0 : index
    %24 = vector.load %arg1[%c0_11, %c0_12, %c0_13] : memref<1x88x196xf32, #tpu.memory_space<vmem>>, vector<1x88x196xf32>
    %25 = vector.broadcast %19 : vector<1x88x1xf32> to vector<1x88x196xf32>
    %26 = arith.mulf %24, %25 : vector<1x88x196xf32>
    %27 = vector.broadcast %23 : vector<1x88x1xf32> to vector<1x88x196xf32>
    %28 = arith.addf %26, %27 : vector<1x88x196xf32>
    %c0_14 = arith.constant 0 : index
    %c0_15 = arith.constant 0 : index
    %c0_16 = arith.constant 0 : index
    %29 = vector.load %arg4[%c0_14, %c0_15, %c0_16] : memref<1x88x196xf32, #tpu.memory_space<vmem>>, vector<1x88x196xf32>
    tpu.vector_store %arg4[%c0_14, %c0_15, %c0_16], %28 {strides = array<i32>} : memref<1x88x196xf32, #tpu.memory_space<vmem>>, vector<1x88x196xf32>,
    return
  }
  func.func @transform_0(%arg0: i32) -> (i32, i32, i32) {
    %c0_i32 = arith.constant 0 : i32
    %c0_i32_0 = arith.constant 0 : i32
    %c0_i32_1 = arith.constant 0 : i32
    return %c0_i32, %arg0, %c0_i32_0 : i32, i32, i32
  }
  func.func @transform_1(%arg0: i32) -> (i32, i32) {
    %c0_i32 = arith.constant 0 : i32
    %c0_i32_0 = arith.constant 0 : i32
    return %arg0, %c0_i32 : i32, i32
  }
  func.func @transform_2(%arg0: i32) -> (i32, i32) {
    %c0_i32 = arith.constant 0 : i32
    %c0_i32_0 = arith.constant 0 : i32
    return %arg0, %c0_i32 : i32, i32
  }
  func.func @transform_3(%arg0: i32) -> (i32, i32, i32) {
    %c0_i32 = arith.constant 0 : i32
    %c0_i32_0 = arith.constant 0 : i32
    %c0_i32_1 = arith.constant 0 : i32
    return %c0_i32, %arg0, %c0_i32_0 : i32, i32, i32
  }
}

</mosaic_0001>

<bundles_post_ra>
// kernel: tpu_custom_call.1
= control target key start
LH: loop header
LB: loop body
LE: loop exit
PB: predicated region body
PF: predicated region fallthrough
CT: control target
= control target key end

     0   :  { %8 = vsyncpa [#allocation3], 0  ;;  %s1636_s0 = inlined_call_operand.vmem [shape: f32[1,176,196], index: 0, kind: input, shape index: {}]   ;;  %s1637_s1 = inlined_call_operand.vmem [shape: f32[176,1], index: 1, kind: input, shape index: {}]   ;;  %s1638_s2 = inlined_call_operand.vmem [shape: f32[176,1], index: 2, kind: input, shape index: {}]   ;;  %s1639_s3 = inlined_call_operand.hbm [shape: f32[1,176,196], index: 3, kind: output, shape index: {}]  }
   0x1   :  { %10 = vsyncpa [#allocation3 + $0x1], 0  ;;  %s1033_s12 = smov 0   ;;  %s1035_s13 = smov 0  }
   0x2   :  { %s1037_s14 = smov 0   ;;  %s1039_s15 = smov 0  }
   0x3 LB: > { %s1054_s16 = sadd.s32 4294967295, %s1008_s15   ;;  %s862_s17 = sadd.s32 4294967294, %s1008_s15   ;;  %s1008_s15 = sphi %s1039_s15, %s1668_s15   ;;  %s1004_s14 = sphi %s1037_s14, %s1667_s14   ;;  %s1000_s13 = sphi %s1035_s13, %s1666_s13   ;;  %s996_s12 = sphi %s1033_s12, %s1665_s12  }
   0x4   : > { %s1058_s18 = sadd.s32 1, %s1008_s15   ;;  %s101_s19 = sadd.s32 1, %s1004_s14 }
   0x5   : > { %s98_s20 = ssub.s32 %s1008_s15, %s1058_s18  ;;  %p111_p0 = scmp.ne.s32.totalorder %s1004_s14, %s1000_s13 }
   0x6   : > { %p99_p1 = scmp.eq.s32.totalorder %s98_s20, 0  ;;  %p112_p2 = scmp.eq.s32.totalorder %s1054_s16, 1 }
   0x7   : > { %p117_p3 = scmp.ne.s32.totalorder %s1000_s13, %s996_s12  ;;  %p118_p4 = scmp.eq.s32.totalorder %s862_s17, 1 }
   0x8   : > { %s1069_s21 = scalar_select %p99_p1, %s1004_s14, %s101_s19  }
   0x9   : > { %p1071_p5 = por %p112_p2, %p111_p0  ;;  %p1075_p6 = por %p118_p4, %p117_p3 }
   0xa   : > { %p865_p7 = scmp.ge.s32.totalorder %s1008_s15, 1  ;;  %p164_p8 = scmp.lt.s32.totalorder %s1008_s15, 3 }
   0xc   : > { %p165_p9 = pnand %p865_p7, %p164_p8 }
   0xe   : > { %168 = sbr.rel (%p165_p9) target bundleno = 387 (0x183), region = 32 }
  0x13   : > { %s199_s24 = smul.u32 11, %s1054_s16  ;;  %vm241_vm0 = vcmask 556032   ;;  %s196_s9 = sand.u32 1, %s1000_s13  }
  0x14   : > { %s878_s10 = smul.u32 176, %s196_s9  ;;  %s760_s26 = scalar_lea.sflag [#allocation3], %s196_s9 }
  0x15   : > { %p200_p10 = scmp.lt.s32.totalorder %s199_s24, 21  ;;  %s877_s17 = smul.u32 176, %s1054_s16 }
  0x16   : > { %s1543_s11 = scalar_lea.vmem [#allocation2], %s878_s10  ;;  %s966_s4 = scalar_lea.hbm %s1639_s3, 352 }
  0x17   : > { %s1670_s24 = smov (!%p200_p10, %s199_s24), 21 }
  0x18   : > { %s874_s25 = sshll.u32 %s1670_s24, 4  ;;  %s868_s29 = sshll.u32 %s1670_s24, 3 }
  0x19   : > { %s1088_s28 = scalar_lea.vmem %s1636_s0, %s874_s25  ;;  %s1332_s5 = scalar_lea.vmem %s1637_s1, %s868_s29 }
  0x1a   : > { %v1091_v0 = vld [vmem:[%s1088_s28 + $0x40] sm:$0xff]  ;;  %v1094_v1 = vld [vmem:[%s1088_s28 + $0x48] sm:$0xff]  ;;  %v1116_v10 = vld [vmem:[%s1088_s28 + $0x58] sm:$0xff]  ;;  %s1430_s8 = scalar_lea.vmem %s1638_s2, %s868_s29  ;;  %s772_s24 = scalar_lea.hbm %s1639_s3, %s877_s17 }
  0x1b   : > { %v1097_v2 = vld [vmem:[%s1088_s28 + $0x20] sm:$0xff]  ;;  %v258_v3 = vsel %vm241_vm0, %v1094_v1, 0.0  ;;  %v1102_v4 = vld [vmem:[%s1088_s28 + $0x28] sm:$0xff]  ;;  %v1121_v13 = vld [vmem:[%s1088_s28 + $0x38] sm:$0xff]  ;;  %v262_v16 = vsel %vm241_vm0, %v1116_v10, 0.0  ;;  %v297_v61 = vmul.f32 %v1116_v10, %v1116_v10  ;;  %v295_v62 = vmul.f32 %v1094_v1, %v1094_v1  ;;  %s773_s25 = sshll.u32 %s1543_s11, 4  ;;  %s774_s25 = int_to_ptr.vmem [resolvable:$true] %s773_s25 }
  0x1c   : > { %v1105_v5 = vld [vmem:[%s1088_s28] sm:$0xff]  ;;  %v1108_v6 = vld [vmem:[%s1088_s28 + $0x8] sm:$0xff]  ;;  %v259_v7 = vadd.f32 %v258_v3, %v1091_v0  ;;  %v250_v8 = vsel %vm241_vm0, %v1102_v4, 0.0  ;;  %v1124_v14 = vld [vmem:[%s1088_s28 + $0x18] sm:$0xff]  ;;  %v254_v18 = vsel %vm241_vm0, %v1121_v13, 0.0  ;;  %v293_v48 = vmul.f32 %v1121_v13, %v1121_v13  ;;  %s775_s16 = sshll.u32 %s772_s24, 4  ;;  %s776_s16 = int_to_ptr.hbm [resolvable:$true] %s775_s16 }
  0x1d   : > { %v242_v9 = vsel %vm241_vm0, %v1108_v6, 0.0  ;;  %v251_v11 = vadd.f32 %v250_v8, %v1097_v2  ;;  %v1127_v15 = vld [vmem:[%s1088_s28 + $0x50] sm:$0xff]  ;;  %v246_v20 = vsel %vm241_vm0, %v1124_v14, 0.0  ;;  %v1145_v24 = vld [vmem:[%s1088_s28 + $0x88] sm:$0xff]  ;;  %v1148_v25 = vld [vmem:[%s1088_s28 + $0x78] sm:$0xff]  ;;  %v287_v36 = vmul.f32 %v1108_v6, %v1108_v6  ;;  %s960_s27 = sshra.s32 %s776_s16, 4  ;;  %s961_s27 = int_to_ptr.hbm [resolvable:$true] %s960_s27 }
  0x1e   : > { %v243_v12 = vadd.f32 %v242_v9, %v1105_v5  ;;  %260 = vadd.xlane.f32.xlu2 %v259_v7  ;;  %v1132_v17 = vld [vmem:[%s1088_s28 + $0x30] sm:$0xff]  ;;  %v263_v21 = vadd.f32 %v262_v16, %v1127_v15  ;;  %v1151_v26 = vld [vmem:[%s1088_s28 + $0x68] sm:$0xff]  ;;  %v1154_v27 = vld [vmem:[%s1088_s28 + $0x80] sm:$0xff]  ;;  %v274_v28 = vsel %vm241_vm0, %v1145_v24, 0.0  ;;  %v270_v30 = vsel %vm241_vm0, %v1148_v25, 0.0  ;;  %p967_p0 = scmp.lt.s32.totalorder %s961_s27, %s1639_s3 }
  0x1f   : > { %252 = vadd.xlane.f32.xlu1 %v251_v11  ;;  %v1137_v19 = vld [vmem:[%s1088_s28 + $0x10] sm:$0xff]  ;;  %v255_v22 = vadd.f32 %v254_v18, %v1132_v17  ;;  %1647 = vst [vmem:[#allocation5_spill] sm:$0xff] %v1151_v26  ;;  %v1164_v31 = vld [vmem:[%s1088_s28 + $0x60] sm:$0xff]  ;;  %v266_v32 = vsel %vm241_vm0, %v1151_v26, 0.0  ;;  %v275_v33 = vadd.f32 %v274_v28, %v1154_v27  ;;  %v1174_v37 = vld [vmem:[%s1088_s28 + $0xa8] sm:$0xff]  ;;  %v286_v39 = vmul.f32 %v1105_v5, %v1105_v5 }
  0x20   : > { %244 = vadd.xlane.f32.xlu0 %v243_v12  ;;  %v247_v23 = vadd.f32 %v246_v20, %v1137_v19  ;;  %v1159_v29 = vld [vmem:[%s1088_s28 + $0x70] sm:$0xff]  ;;  %1648 = vst [vmem:[#allocation6_spill] sm:$0xff] %v1164_v31  ;;  %v267_v35 = vadd.f32 %v266_v32, %v1164_v31  ;;  %v1177_v38 = vld [vmem:[%s1088_s28 + $0x98] sm:$0xff]  ;;  %v308_v40 = vsel %vm241_vm0, %v287_v36, 0.0  ;;  %v1183_v41 = vld [vmem:[%s1088_s28 + $0xa0] sm:$0xff]  ;;  %v282_v42 = vsel %vm241_vm0, %v1174_v37, 0.0 }
  0x21   : > { %v271_v34 = vadd.f32 %v270_v30, %v1159_v29  ;;  %1649 = vst [vmem:[#allocation7_spill] sm:$0xff] %v1174_v37  ;;  %v1188_v43 = vld [vmem:[%s1088_s28 + $0x90] sm:$0xff]  ;;  %v278_v44 = vsel %vm241_vm0, %v1177_v38, 0.0  ;;  %v309_v45 = vadd.f32 %v308_v40, %v286_v39  ;;  %v283_v46 = vadd.f32 %v282_v42, %v1183_v41  ;;  %s962_s28 = scalar_lea.hbm %s961_s27, 176 }
  0x22   : > { %1650 = vst [vmem:[#allocation8_spill] sm:$0xff] %v1177_v38  ;;  %v279_v47 = vadd.f32 %v278_v44, %v1188_v43  ;;  %v291_v49 = vmul.f32 %v1102_v4, %v1102_v4  ;;  %v289_v50 = vmul.f32 %v1124_v14, %v1124_v14  ;;  %v292_v51 = vmul.f32 %v1132_v17, %v1132_v17  ;;  %p963_p11 = scmp.ne.s32.totalorder %s961_s27, %s962_s28  ;;  %p968_p1 = scmp.lt.s32.totalorder %s966_s4, %s962_s28 }
  0x23   : > { %1651 = vst [vmem:[#allocation9_spill] sm:$0xff] %v1188_v43  ;;  %v290_v52 = vmul.f32 %v1097_v2, %v1097_v2  ;;  %v320_v53 = vsel %vm241_vm0, %v293_v48, 0.0  ;;  %v288_v54 = vmul.f32 %v1137_v19, %v1137_v19  ;;  %v299_v60 = vmul.f32 %v1151_v26, %v1151_v26 }
  0x24   : > { %v316_v55 = vsel %vm241_vm0, %v291_v49, 0.0  ;;  %v312_v56 = vsel %vm241_vm0, %v289_v50, 0.0  ;;  %v321_v57 = vadd.f32 %v320_v53, %v292_v51  ;;  %v298_v63 = vmul.f32 %v1164_v31, %v1164_v31  ;;  %p964_p12 = pnand %p963_p11, %p1071_p5  ;;  %p969_p2 = por %p968_p1, %p967_p0 }
  0x25   : > { %v317_v58 = vadd.f32 %v316_v55, %v290_v52  ;;  %v313_v59 = vadd.f32 %v312_v56, %v288_v54  ;;  %v296_v3 = vmul.f32 %v1127_v15, %v1127_v15  ;;  %v332_v7 = vsel %vm241_vm0, %v299_v60, 0.0 }
  0x26   : > { %264 = vadd.xlane.f32.xlu2 %v263_v21  ;;  %v294_v8 = vmul.f32 %v1091_v0, %v1091_v0  ;;  %v328_v9 = vsel %vm241_vm0, %v297_v61, 0.0  ;;  %v324_v11 = vsel %vm241_vm0, %v295_v62, 0.0  ;;  %v333_v12 = vadd.f32 %v332_v7, %v298_v63  ;;  %p965_p13 = pneg %p964_p12 }
  0x27   : > { %256 = vadd.xlane.f32.xlu1 %v255_v22  ;;  %v329_v16 = vadd.f32 %v328_v9, %v296_v3  ;;  %v305_v20 = vmul.f32 %v1177_v38, %v1177_v38  ;;  %v303_v21 = vmul.f32 %v1145_v24, %v1145_v24  ;;  %v301_v22 = vmul.f32 %v1148_v25, %v1148_v25 }
  0x28   : > { %248 = vadd.xlane.f32.xlu0 %v247_v23  ;;  %v325_v18 = vadd.f32 %v324_v11, %v294_v8  ;;  %v304_v23 = vmul.f32 %v1188_v43, %v1188_v43  ;;  %v302_v28 = vmul.f32 %v1154_v27, %v1154_v27  ;;  %v300_v32 = vmul.f32 %v1159_v29, %v1159_v29  ;;  %p970_p3 = pnand %p969_p2, %p965_p13 }
  0x29   : > { %v344_v30 = vsel %vm241_vm0, %v305_v20, 0.0  ;;  %v307_v40 = vmul.f32 %v1174_v37, %v1174_v37  ;;  %v306_v42 = vmul.f32 %v1183_v41, %v1183_v41  ;;  %v1010_v61 = vmov 0  }
  0x2a   : > { %921 = vset.pattern.permute.xlu1 %v1010_v61  ;;  %923 = vset.pattern.permute.xlu0 %v1010_v61 }
  0x2b   : > { %v348_v44 = vsel %vm241_vm0, %v307_v40, 0.0  ;;  %922 = vset.pattern.permute.xlu2 %v1010_v61 }
  0x2e   : > { %276 = vadd.xlane.f32.xlu2 %v275_v33  ;;  %v340_v33 = vsel %vm241_vm0, %v303_v21, 0.0 }
  0x2f   : > { %272 = vadd.xlane.f32.xlu1 %v271_v34  ;;  %v336_v34 = vsel %vm241_vm0, %v301_v22, 0.0  ;;  %v341_v36 = vadd.f32 %v340_v33, %v302_v28 }
  0x30   : > { %268 = vadd.xlane.f32.xlu0 %v267_v35  ;;  %v345_v35 = vadd.f32 %v344_v30, %v304_v23  ;;  %v337_v39 = vadd.f32 %v336_v34, %v300_v32 }
  0x36   : > { %310 = vadd.xlane.f32.xlu2 %v309_v45  ;;  %v349_v45 = vadd.f32 %v348_v44, %v306_v42 }
  0x37   : > { %284 = vadd.xlane.f32.xlu1 %v283_v46 }
  0x38   : > { %280 = vadd.xlane.f32.xlu0 %v279_v47 }
  0x3e   : > { %322 = vadd.xlane.f32.xlu2 %v321_v57 }
  0x3f   : > { %318 = vadd.xlane.f32.xlu1 %v317_v58 }
  0x40   : > { %314 = vadd.xlane.f32.xlu0 %v313_v59 }
  0x46   : > { %334 = vadd.xlane.f32.xlu2 %v333_v12 }
  0x47   : > { %330 = vadd.xlane.f32.xlu1 %v329_v16 }
  0x48   : > { %326 = vadd.xlane.f32.xlu0 %v325_v18 }
  0x4e   : > { %346 = vadd.xlane.f32.xlu2 %v345_v35 }
  0x4f   : > { %342 = vadd.xlane.f32.xlu1 %v341_v36 }
  0x50   : > { %338 = vadd.xlane.f32.xlu0 %v337_v39 }
  0x58   : > { %350 = vadd.xlane.f32.xlu0 %v349_v45 }
  0x91   : > { %v261_v46 = vpop.xlane.xlu2 %260 }
  0x92   : > { %v253_v47 = vpop.xlane.xlu1 %252  ;;  %v1265_v34 = vmul.f32 0.0051020407, %v261_v46 }
  0x93   : > { %v245_v48 = vpop.xlane.xlu0 %244  ;;  %v1252_v7 = vmul.f32 0.0051020407, %v253_v47 }
  0x94   : > { %v1244_v55 = vmul.f32 0.0051020407, %v245_v48 }
  0x95   : > { %v376_v21 = vmul.f32 %v1252_v7, %v1252_v7 }
  0x96   : > { %v374_v57 = vmul.f32 %v1244_v55, %v1244_v55 }
  0x99   : > { %v265_v49 = vpop.xlane.xlu2 %264 }
  0x9a   : > { %v257_v50 = vpop.xlane.xlu1 %256  ;;  %v1269_v39 = vmul.f32 0.0051020407, %v265_v49 }
  0x9b   : > { %v249_v51 = vpop.xlane.xlu0 %248  ;;  %v1250_v63 = vmul.f32 0.0051020407, %v257_v50 }
  0x9c   : > { %v1254_v8 = vmul.f32 0.0051020407, %v249_v51  ;;  %v378_v51 = vmul.f32 %v1265_v34, %v1265_v34 }
  0x9d   : > { %v377_v12 = vmul.f32 %v1250_v63, %v1250_v63 }
  0x9e   : > { %v375_v22 = vmul.f32 %v1254_v8, %v1254_v8 }
  0xa1   : > { %v277_v52 = vpop.xlane.xlu2 %276 }
  0xa2   : > { %v273_v53 = vpop.xlane.xlu1 %272  ;;  %v1288_v61 = vmul.f32 0.0051020407, %v277_v52 }
  0xa3   : > { %v269_v54 = vpop.xlane.xlu0 %268 }
  0xa4   : > { %v1267_v35 = vmul.f32 0.0051020407, %v269_v54 }
  0xa6   : > { %v380_v49 = vmul.f32 %v1267_v35, %v1267_v35 }
  0xa9   : > { %v311_v56 = vpop.xlane.xlu2 %310 }
  0xaa   : > { %v1248_v58 = vpop.xlane.xlu1 %284  ;;  %v363_v59 = vmul.f32 0.0051020407, %v311_v56 }
  0xab   : > { %v281_v60 = vpop.xlane.xlu0 %280 }
  0xac   : > { %v385_v62 = vsub.f32 %v363_v59, %v374_v57  ;;  %v379_v59 = vmul.f32 %v1269_v39, %v1269_v39 }
  0xae   : > { %v396_v3 = vmax.f32 %v385_v62, 0.0 }
  0xb0   : > { %v1256_v9 = vadd.f32 0.001, %v396_v3 }
  0xb1   : > { %v323_v11 = vpop.xlane.xlu2 %322 }
  0xb2   : > { %924 = vrsqrt.f32 %v1256_v9  ;;  %v319_v16 = vpop.xlane.xlu1 %318  ;;  %v366_v18 = vmul.f32 0.0051020407, %v323_v11  ;;  %vm424_vm2 = vweird.f32 %v1256_v9 }
  0xb3   : > { %v315_v20 = vpop.xlane.xlu0 %314  ;;  %v365_v23 = vmul.f32 0.0051020407, %v319_v16  ;;  %v1293_v16 = vmul.f32 0.0051020407, %v273_v53 }
  0xb4   : > { %v364_v28 = vmul.f32 0.0051020407, %v315_v20  ;;  %v388_v30 = vsub.f32 %v366_v18, %v377_v12 }
  0xb5   : > { %v387_v32 = vsub.f32 %v365_v23, %v376_v21  ;;  %v382_v23 = vmul.f32 %v1288_v61, %v1288_v61  ;;  %v381_v53 = vmul.f32 %v1293_v16, %v1293_v16 }
  0xb6   : > { %v386_v33 = vsub.f32 %v364_v28, %v375_v22  ;;  %v399_v36 = vmax.f32 %v388_v30, 0.0  ;;  %v1300_v30 = vmul.f32 0.0051020407, %v281_v60 }
  0xb7   : > { %v398_v40 = vmax.f32 %v387_v32, 0.0 }
  0xb8   : > { %v397_v42 = vmax.f32 %v386_v33, 0.0  ;;  %v1271_v44 = vpop.eup %924  ;;  %v1273_v45 = vadd.f32 0.001, %v399_v36 }
  0xb9   : > { %v419_v47 = vmul.f32 %v1271_v44, %v1256_v9  ;;  %v1277_v48 = vadd.f32 0.001, %v398_v40  ;;  %v335_v46 = vpop.xlane.xlu2 %334  ;;  %vm425_vm1 = vweird.f32 %v1271_v44 }
  0xba   : > { %v1279_v50 = vadd.f32 0.001, %v397_v42  ;;  %926 = vrsqrt.f32 %v1273_v45  ;;  %v331_v54 = vpop.xlane.xlu1 %330  ;;  %v369_v56 = vmul.f32 0.0051020407, %v335_v46  ;;  %v1309_v42 = vmul.f32 0.0051020407, %v1248_v58  ;;  %vm426_vm4 = vmor %vm424_vm2, %vm425_vm1 }
  0xbb   : > { %v327_v57 = vpop.xlane.xlu0 %326  ;;  %v420_v62 = vmul.f32 %v1271_v44, %v419_v47  ;;  %928 = vrsqrt.f32 %v1277_v48  ;;  %v368_v3 = vmul.f32 0.0051020407, %v331_v54  ;;  %vm444_vm3 = vweird.f32 %v1277_v48 }
  0xbc   : > { %930 = vrsqrt.f32 %v1279_v50  ;;  %v391_v11 = vsub.f32 %v369_v56, %v380_v49  ;;  %v367_v12 = vmul.f32 0.0051020407, %v327_v57  ;;  %vm434_vm7 = vweird.f32 %v1279_v50 }
  0xbd   : > { %v421_v18 = vmul.f32 0.5, %v420_v62  ;;  %v390_v20 = vsub.f32 %v368_v3, %v379_v59  ;;  %vm454_vm11 = vweird.f32 %v1273_v45 }
  0xbe   : > { %v402_v21 = vmax.f32 %v391_v11, 0.0  ;;  %v389_v22 = vsub.f32 %v367_v12, %v378_v51  ;;  %v383_v11 = vmul.f32 %v1300_v30, %v1300_v30 }
  0xbf   : > { %v422_v52 = vsub.f32 1.5, %v421_v18  ;;  %v401_v32 = vmax.f32 %v390_v20, 0.0 }
  0xc0   : > { %v1298_v28 = vpop.eup %926  ;;  %v1302_v33 = vadd.f32 0.001, %v402_v21  ;;  %v400_v36 = vmax.f32 %v389_v22, 0.0 }
  0xc1   : > { %v1304_v40 = vpop.eup %928  ;;  %v449_v47 = vmul.f32 %v1298_v28, %v1273_v45  ;;  %v347_v46 = vpop.xlane.xlu2 %346  ;;  %v1318_v49 = vadd.f32 0.001, %v401_v32  ;;  %v423_v58 = vmul.f32 %v1271_v44, %v422_v52  ;;  %vm455_vm10 = vweird.f32 %v1298_v28 }
  0xc2   : > { %v1314_v60 = vpop.eup %930  ;;  %v439_v51 = vmul.f32 %v1304_v40, %v1277_v48  ;;  %932 = vrsqrt.f32 %v1302_v33  ;;  %v343_v54 = vpop.xlane.xlu1 %342  ;;  %v1325_v62 = vadd.f32 0.001, %v400_v36  ;;  %v372_v18 = vmul.f32 0.0051020407, %v347_v46  ;;  %v528_v36 = vld [vmem:[%s1332_s5] sm:$0xff]  ;;  %vm1411_vm13 = vmor %vm454_vm11, %vm455_vm10 }
  0xc3   : > { %v339_v56 = vpop.xlane.xlu0 %338  ;;  %v450_v57 = vmul.f32 %v1298_v28, %v449_v47  ;;  %v429_v59 = vmul.f32 %v1314_v60, %v1279_v50  ;;  %v371_v3 = vmul.f32 0.0051020407, %v343_v54  ;;  %934 = vrsqrt.f32 %v1318_v49  ;;  %v530_v50 = vld [vmem:[%s1332_s5 + $0x10] sm:$0xff] }
  0xc4   : > { %v440_v12 = vmul.f32 %v1304_v40, %v439_v51  ;;  %936 = vrsqrt.f32 %v1325_v62  ;;  %v394_v52 = vsub.f32 %v372_v18, %v383_v11  ;;  %v370_v32 = vmul.f32 0.0051020407, %v339_v56 }
  0xc5   : > { %v430_v20 = vmul.f32 %v1314_v60, %v429_v59  ;;  %v393_v22 = vsub.f32 %v371_v3, %v382_v23  ;;  %v451_v47 = vmul.f32 0.5, %v450_v57  ;;  %v427_v46 = vsel %vm426_vm4, %v1271_v44, %v423_v58 }
  0xc6   : > { %v441_v21 = vmul.f32 0.5, %v440_v12  ;;  %vm445_vm5 = vweird.f32 %v1304_v40  ;;  %v405_v38 = vmax.f32 %v394_v52, 0.0  ;;  %v392_v43 = vsub.f32 %v370_v32, %v381_v53 }
  0xc7   : > { %v431_v51 = vmul.f32 0.5, %v430_v20  ;;  %v404_v59 = vmax.f32 %v393_v22, 0.0  ;;  %v1351_v56 = vmul.f32 %v528_v36, %v427_v46  ;;  %vm435_vm6 = vweird.f32 %v1314_v60  ;;  %vm1378_vm8 = vmor %vm444_vm3, %vm445_vm5 }
  0xc8   : > { %v1347_v9 = vpop.eup %932  ;;  %v442_v54 = vsub.f32 1.5, %v441_v21  ;;  %v1358_v44 = vadd.f32 0.001, %v405_v38  ;;  %v403_v58 = vmax.f32 %v392_v43, 0.0  ;;  %v384_v38 = vmul.f32 %v1309_v42, %v1309_v42  ;;  %vm436_vm9 = vmor %vm434_vm7, %vm435_vm6 }
  0xc9   : > { %v432_v12 = vsub.f32 1.5, %v431_v51  ;;  %v479_v23 = vmul.f32 %v1347_v9, %v1302_v33  ;;  %v1354_v57 = vpop.eup %934  ;;  %v1356_v3 = vadd.f32 0.001, %v404_v59  ;;  %585 = vperm.xlu1 %921, %v1351_v56   ;;  %v452_v36 = vsub.f32 1.5, %v451_v47 }
  0xca   : > { %v443_v18 = vmul.f32 %v1304_v40, %v442_v54  ;;  %v1361_v53 = vpop.eup %936  ;;  %v469_v20 = vmul.f32 %v1354_v57, %v1318_v49  ;;  %v1384_v46 = vadd.f32 0.001, %v403_v58  ;;  %v529_v54 = vld [vmem:[%s1332_s5 + $0x8] sm:$0xff]  ;;  %vm464_vm14 = vweird.f32 %v1325_v62 }
  0xcb   : > { %v351_v11 = vpop.xlane.xlu0 %350  ;;  %v480_v21 = vmul.f32 %v1347_v9, %v479_v23  ;;  %v433_v52 = vmul.f32 %v1314_v60, %v432_v12  ;;  %v459_v43 = vmul.f32 %v1361_v53, %v1325_v62  ;;  %938 = vrsqrt.f32 %v1356_v3 }
  0xcc   : > { %v373_v22 = vmul.f32 0.0051020407, %v351_v11  ;;  %v470_v51 = vmul.f32 %v1354_v57, %v469_v20  ;;  %940 = vrsqrt.f32 %v1358_v44  ;;  %v447_v48 = vsel %vm1378_vm8, %v1304_v40, %v443_v18 }
  0xcd   : > { %v460_v59 = vmul.f32 %v1361_v53, %v459_v43  ;;  %v437_v47 = vsel %vm436_vm9, %v1314_v60, %v433_v52  ;;  %v481_v11 = vmul.f32 0.5, %v480_v21  ;;  %942 = vrsqrt.f32 %v1384_v46 }
  0xce   : > { %v395_v12 = vsub.f32 %v373_v22, %v384_v38  ;;  %v471_v23 = vmul.f32 0.5, %v470_v51  ;;  %v541_v26 = vmul.f32 %v530_v50, %v447_v48  ;;  %v1396_v31 = vmul.f32 %v529_v54, %v437_v47  ;;  %v531_v50 = vld [vmem:[%s1332_s5 + $0x18] sm:$0xff] }
  0xcf   : > { %v461_v58 = vmul.f32 0.5, %v460_v59  ;;  %v453_v37 = vmul.f32 %v1298_v28, %v452_v36  ;;  %v482_v52 = vsub.f32 1.5, %v481_v11  ;;  %vm465_vm12 = vweird.f32 %v1361_v53  ;;  %v532_v59 = vld [vmem:[%s1332_s5 + $0x20] sm:$0xff] }
  0xd0   : > { %v406_v20 = vmax.f32 %v395_v12, 0.0  ;;  %595 = vperm.xlu0 %923, %v541_v26   ;;  %590 = vperm.xlu2 %922, %v1396_v31   ;;  %v472_v21 = vsub.f32 1.5, %v471_v23  ;;  %vm466_vm15 = vmor %vm464_vm14, %vm465_vm12  ;;  %vm475_vm1 = vweird.f32 %v1354_v57  ;;  %vm485_vm2 = vweird.f32 %v1347_v9 }
  0xd1   : > { %v1400_v22 = vpop.eup %938  ;;  %v462_v40 = vsub.f32 1.5, %v461_v58  ;;  %v457_v51 = vsel %vm1411_vm13, %v1298_v28, %v453_v37  ;;  %v483_v48 = vmul.f32 %v1347_v9, %v482_v52  ;;  %vm474_vm3 = vweird.f32 %v1318_v49  ;;  %v1464_v49 = vld [vmem:[%s1430_s8 + $0x10] sm:$0xff] }
  0xd2   : > { %v1403_v60 = vadd.f32 0.001, %v406_v20  ;;  %v941_v18 = vpop.eup %940  ;;  %v499_v38 = vmul.f32 %v1400_v22, %v1356_v3  ;;  %v473_v28 = vmul.f32 %v1354_v57, %v472_v21  ;;  %v1440_v11 = vmul.f32 %v531_v50, %v457_v51  ;;  %v1445_v20 = vld [vmem:[%s1430_s8] sm:$0xff]  ;;  %vm1459_vm6 = vmor %vm474_vm3, %vm475_vm1  ;;  %v537_v51 = vld [vmem:[%s1332_s5 + $0x48] sm:$0xff] }
  0xd3   : > { %v509_v43 = vmul.f32 %v941_v18, %v1358_v44  ;;  %v1415_v32 = vpop.eup %942  ;;  %v463_v54 = vmul.f32 %v1361_v53, %v462_v40  ;;  %vm484_vm4 = vweird.f32 %v1302_v33  ;;  %v1451_v40 = vmul.f32 %v1351_v56, %v1244_v55  ;;  %v536_v33 = vld [vmem:[%s1332_s5 + $0x40] sm:$0xff] }
  0xd4   : > { %944 = vrsqrt.f32 %v1403_v60  ;;  %v500_v36 = vmul.f32 %v1400_v22, %v499_v38  ;;  %v489_v62 = vmul.f32 %v1415_v32, %v1384_v46  ;;  %vm515_vm5 = vweird.f32 %v941_v18  ;;  %vm1473_vm7 = vmor %vm484_vm4, %vm485_vm2 }
  0xd5   : > { %v510_v12 = vmul.f32 %v941_v18, %v509_v43  ;;  %v467_v37 = vsel %vm466_vm15, %v1361_v53, %v463_v54  ;;  %v1467_v55 = vmul.f32 %v541_v26, %v1252_v7  ;;  %v572_v45 = vsub.f32 %v1445_v20, %v1451_v40  ;;  %v538_v43 = vld [vmem:[%s1332_s5 + $0x50] sm:$0xff] }
  0xd6   : > { %v490_v23 = vmul.f32 %v1415_v32, %v489_v62  ;;  %v1442_v58 = vmul.f32 %v532_v59, %v467_v37  ;;  %v501_v53 = vmul.f32 0.5, %v500_v36  ;;  %vm514_vm8 = vweird.f32 %v1358_v44  ;;  %v534_v62 = vld [vmem:[%s1332_s5 + $0x30] sm:$0xff] }
  0xd7   : > { %v511_v47 = vmul.f32 0.5, %v510_v12  ;;  %v477_v26 = vsel %vm1459_vm6, %v1354_v57, %v473_v28  ;;  %v487_v7 = vsel %vm1473_vm7, %v1347_v9, %v483_v48  ;;  %vm516_vm9 = vmor %vm514_vm8, %vm515_vm5  ;;  %v533_v12 = vld [vmem:[%s1332_s5 + $0x28] sm:$0xff]  ;;  %v574_v44 = vsub.f32 %v1464_v49, %v1467_v55  ;;  %v535_v49 = vld [vmem:[%s1332_s5 + $0x38] sm:$0xff] }
  0xd8   : > { %v491_v38 = vmul.f32 0.5, %v490_v23  ;;  %600 = vperm.xlu2 %922, %v1440_v11   ;;  %605 = vperm.xlu1 %921, %v1442_v58   ;;  %v502_v50 = vsub.f32 1.5, %v501_v53  ;;  %v544_v23 = vmul.f32 %v533_v12, %v477_v26  ;;  %v545_v20 = vmul.f32 %v534_v62, %v487_v7  ;;  %v1496_v9 = vld [vmem:[%s1430_s8 + $0x48] sm:$0xff]  ;;  %v557_v7 = vld [vmem:[%s1430_s8 + $0x38] sm:$0xff]  ;;  %v556_v12 = vld [vmem:[%s1430_s8 + $0x30] sm:$0xff] }
  0xd9   : > { %v512_v52 = vsub.f32 1.5, %v511_v47  ;;  %vm505_vm10 = vweird.f32 %v1400_v22  ;;  %vm495_vm11 = vweird.f32 %v1415_v32  ;;  %vm504_vm12 = vweird.f32 %v1356_v3 }
  0xda   : > { %v1453_v21 = vpop.eup %944  ;;  %v492_v54 = vsub.f32 1.5, %v491_v38  ;;  %v503_v28 = vmul.f32 %v1400_v22, %v502_v50  ;;  %vm494_vm13 = vweird.f32 %v1384_v46  ;;  %v562_v53 = vmul.f32 %v1396_v31, %v1254_v8  ;;  %vm506_vm14 = vmor %vm504_vm12, %vm505_vm10 }
  0xdb   : > { %v519_v56 = vmul.f32 %v1453_v21, %v1403_v60  ;;  %v513_v36 = vmul.f32 %v941_v18, %v512_v52  ;;  %v551_v52 = vld [vmem:[%s1430_s8 + $0x8] sm:$0xff]  ;;  %vm496_vm15 = vmor %vm494_vm13, %vm495_vm11  ;;  %vm525_vm1 = vweird.f32 %v1453_v21  ;;  %vm524_vm2 = vweird.f32 %v1403_v60 }
  0xdc   : > { %v493_v48 = vmul.f32 %v1415_v32, %v492_v54  ;;  %v573_v46 = vsub.f32 %v551_v52, %v562_v53  ;;  %v565_v8 = vmul.f32 %v1442_v58, %v1265_v34  ;;  %vm526_vm3 = vmor %vm524_vm2, %vm525_vm1  ;;  %v564_v60 = vmul.f32 %v1440_v11, %v1250_v63  ;;  %v553_v34 = vld [vmem:[%s1430_s8 + $0x18] sm:$0xff] }
  0xdd   : > { %v520_v59 = vmul.f32 %v1453_v21, %v519_v56  ;;  %v517_v37 = vsel %vm516_vm9, %v941_v18, %v513_v36  ;;  %v567_v54 = vmul.f32 %v545_v20, %v1267_v35 }
  0xde   : > { %v548_v47 = vmul.f32 %v537_v51, %v517_v37  ;;  %v497_v3 = vsel %vm496_vm15, %v1415_v32, %v493_v48  ;;  %v575_v50 = vsub.f32 %v553_v34, %v564_v60 }
  0xdf   : > { %v521_v57 = vmul.f32 0.5, %v520_v59  ;;  %v546_v56 = vmul.f32 %v535_v49, %v497_v3  ;;  %v560_v59 = vld [vmem:[%s1430_s8 + $0x50] sm:$0xff]  ;;  %v578_v37 = vsub.f32 %v556_v12, %v567_v54 }
  0xe0   : > { %630 = vperm.xlu0 %923, %v548_v47   ;;  %v570_v18 = vmul.f32 %v548_v47, %v1300_v30  ;;  %610 = vperm.xlu2 %922, %v544_v23   ;;  %v507_v30 = vsel %vm506_vm14, %v1400_v22, %v503_v28  ;;  %v554_v22 = vld [vmem:[%s1430_s8 + $0x20] sm:$0xff] }
  0xe1   : > { %615 = vperm.xlu1 %921, %v545_v20   ;;  %v522_v38 = vsub.f32 1.5, %v521_v57  ;;  %v547_v55 = vmul.f32 %v536_v33, %v507_v30  ;;  %v576_v36 = vsub.f32 %v554_v22, %v565_v8  ;;  %v568_v26 = vmul.f32 %v546_v56, %v1293_v16  ;;  %v555_v16 = vld [vmem:[%s1430_s8 + $0x28] sm:$0xff] }
  0xe2   : > { %v581_v40 = vsub.f32 %v1496_v9, %v570_v18 }
  0xe3   : > { %v523_v31 = vmul.f32 %v1453_v21, %v522_v38  ;;  %v579_v58 = vsub.f32 %v557_v7, %v568_v26  ;;  %v569_v11 = vmul.f32 %v547_v55, %v1288_v61 }
  0xe5   : > { %v527_v32 = vsel %vm526_vm3, %v1453_v21, %v523_v31 }
  0xe6   : > { %v549_v51 = vmul.f32 %v538_v43, %v527_v32 }
  0xe8   : > { %667 = vperm.xlu0 %923, %v573_v46   ;;  %620 = vperm.xlu2 %922, %v546_v56   ;;  %v571_v21 = vmul.f32 %v549_v51, %v1309_v42 }
  0xe9   : > { %625 = vperm.xlu1 %921, %v547_v55  }
  0xea   : > { %v582_v62 = vsub.f32 %v560_v59, %v571_v21 }
  0xf0   : > { %682 = vperm.xlu0 %923, %v576_v36   ;;  %635 = vperm.xlu2 %922, %v549_v51  }
  0xf1   : > { %662 = vperm.xlu1 %921, %v572_v45   ;;  %v566_v45 = vmul.f32 %v544_v23, %v1269_v39 }
  0xf3   : > { %v577_v63 = vsub.f32 %v555_v16, %v566_v45  ;;  %v1662_v16 = vld [vmem:[#allocation5_spill] sm:$0xff] }
  0xf8   : > { %697 = vperm.xlu0 %923, %v579_v58   ;;  %672 = vperm.xlu2 %922, %v574_v44   ;;  %v558_v44 = vld [vmem:[%s1430_s8 + $0x40] sm:$0xff] }
  0xf9   : > { %677 = vperm.xlu1 %921, %v575_v50   ;;  %v580_v47 = vsub.f32 %v558_v44, %v569_v11 }
 0x100   : > { %712 = vperm.xlu0 %923, %v582_v62   ;;  %687 = vperm.xlu2 %922, %v577_v63  }
 0x101   : > { %692 = vperm.xlu1 %921, %v578_v37  }
 0x108   : > { %702 = vperm.xlu2 %922, %v580_v47  }
 0x109   : > { %707 = vperm.xlu1 %921, %v581_v40  }
 0x12a   : > { %v591_v35 = vpop.permute.xlu2 %590 }
 0x132   : > { %v601_v42 = vpop.permute.xlu2 %600 }
 0x13a   : > { %v611_v39 = vpop.permute.xlu2 %610 }
 0x13b   : > { %v586_v23 = vpop.permute.xlu1 %585  ;;  %v648_v30 = vmul.f32 %v611_v39, %v1127_v15  ;;  %v649_v33 = vmul.f32 %v611_v39, %v1116_v10  ;;  %v1664_v39 = vld [vmem:[#allocation8_spill] sm:$0xff] }
 0x13c   : > { %v638_v15 = vmul.f32 %v586_v23, %v1105_v5  ;;  %v639_v10 = vmul.f32 %v586_v23, %v1108_v6 }
 0x142   : > { %v621_v20 = vpop.permute.xlu2 %620  ;;  %v596_v9 = vpop.permute.xlu0 %595 }
 0x143   : > { %v642_v48 = vmul.f32 %v596_v9, %v1097_v2  ;;  %v643_v61 = vmul.f32 %v596_v9, %v1102_v4  ;;  %v640_v2 = vmul.f32 %v591_v35, %v1137_v19  ;;  %v641_v4 = vmul.f32 %v591_v35, %v1124_v14 }
 0x144   : > { %v653_v34 = vmul.f32 %v621_v20, %v1148_v25 }
 0x14a   : > { %v606_v57 = vpop.permute.xlu1 %605  ;;  %v1534_v28 = vpop.permute.xlu2 %635 }
 0x14b   : > { %v646_v14 = vmul.f32 %v606_v57, %v1091_v0  ;;  %v647_v26 = vmul.f32 %v606_v57, %v1094_v1  ;;  %v644_v1 = vmul.f32 %v601_v42, %v1132_v17  ;;  %v1660_v17 = vld [vmem:[#allocation7_spill] sm:$0xff] }
 0x14c   : > { %v659_v25 = vmul.f32 %v1534_v28, %v1660_v17 }
 0x152   : > { %v1541_v18 = vpop.permute.xlu0 %630  ;;  %v673_v40 = vpop.permute.xlu2 %672 }
 0x153   : > { %v616_v53 = vpop.permute.xlu1 %615  ;;  %v719_v52 = vadd.f32 %v673_v40, %v642_v48  ;;  %v720_v38 = vadd.f32 %v673_v40, %v643_v61  ;;  %v657_v23 = vmul.f32 %v1541_v18, %v1664_v39 }
 0x154   : > { %v651_v62 = vmul.f32 %v616_v53, %v1662_v16 }
 0x155   : > { %741 = vst [vmem:[%s1543_s11 + $0x20] sm:$0xff] %v719_v52 }
 0x156   : > { %742 = vst.msk [vmem:[%s1543_s11 + $0x28] sm:$0xff] %vm241_vm0, %v720_v38 }
 0x15a   : > { %v668_v3 = vpop.permute.xlu0 %667  ;;  %v688_v46 = vpop.permute.xlu2 %687 }
 0x15b   : > { %v626_v49 = vpop.permute.xlu1 %625  ;;  %v717_v55 = vadd.f32 %v668_v3, %v640_v2  ;;  %v725_v56 = vadd.f32 %v688_v46, %v648_v30  ;;  %v726_v31 = vadd.f32 %v688_v46, %v649_v33  ;;  %v718_v8 = vadd.f32 %v668_v3, %v641_v4 }
 0x15c   : > { %v654_v19 = vmul.f32 %v626_v49, %v1154_v27  ;;  %v655_v32 = vmul.f32 %v626_v49, %v1145_v24  ;;  %v652_v24 = vmul.f32 %v621_v20, %v1159_v29  ;;  %v645_v27 = vmul.f32 %v601_v42, %v1121_v13  ;;  %v1661_v29 = vld [vmem:[#allocation6_spill] sm:$0xff] }
 0x15d   : > { %739 = vst [vmem:[%s1543_s11 + $0x10] sm:$0xff] %v717_v55  ;;  %v658_v13 = vmul.f32 %v1534_v28, %v1183_v41  ;;  %v650_v12 = vmul.f32 %v616_v53, %v1661_v29  ;;  %v1663_v41 = vld [vmem:[#allocation9_spill] sm:$0xff] }
 0x15e   : > { %747 = vst [vmem:[%s1543_s11 + $0x50] sm:$0xff] %v725_v56  ;;  %v656_v42 = vmul.f32 %v1541_v18, %v1663_v41 }
 0x15f   : > { %748 = vst.msk [vmem:[%s1543_s11 + $0x58] sm:$0xff] %vm241_vm0, %v726_v31 }
 0x160   : > { %740 = vst.msk [vmem:[%s1543_s11 + $0x18] sm:$0xff] %vm241_vm0, %v718_v8 }
 0x162   : > { %v683_v22 = vpop.permute.xlu0 %682  ;;  %v703_v36 = vpop.permute.xlu2 %702 }
 0x163   : > { %v663_v43 = vpop.permute.xlu1 %662  ;;  %v723_v51 = vadd.f32 %v683_v22, %v646_v14  ;;  %v731_v7 = vadd.f32 %v703_v36, %v654_v19  ;;  %v732_v5 = vadd.f32 %v703_v36, %v655_v32  ;;  %v724_v6 = vadd.f32 %v683_v22, %v647_v26 }
 0x164   : > { %v715_v60 = vadd.f32 %v663_v43, %v638_v15  ;;  %v716_v0 = vadd.f32 %v663_v43, %v639_v10 }
 0x165   : > { %745 = vst [vmem:[%s1543_s11 + $0x40] sm:$0xff] %v723_v51 }
 0x166   : > { %737 = vst [vmem:[%s1543_s11] sm:$0xff] %v715_v60 }
 0x167   : > { %738 = vst.msk [vmem:[%s1543_s11 + $0x8] sm:$0xff] %vm241_vm0, %v716_v0 }
 0x168   : > { %753 = vst [vmem:[%s1543_s11 + $0x80] sm:$0xff] %v731_v7 }
 0x169   : > { %754 = vst.msk [vmem:[%s1543_s11 + $0x88] sm:$0xff] %vm241_vm0, %v732_v5 }
 0x16a   : > { %746 = vst.msk [vmem:[%s1543_s11 + $0x48] sm:$0xff] %vm241_vm0, %v724_v6  ;;  %v698_v58 = vpop.permute.xlu0 %697 }
 0x16b   : > { %v678_v50 = vpop.permute.xlu1 %677  ;;  %v729_v21 = vadd.f32 %v698_v58, %v652_v24  ;;  %v730_v59 = vadd.f32 %v698_v58, %v653_v34 }
 0x16c   : > { %v721_v54 = vadd.f32 %v678_v50, %v644_v1  ;;  %v722_v45 = vadd.f32 %v678_v50, %v645_v27 }
 0x16d   : > { %751 = vst [vmem:[%s1543_s11 + $0x70] sm:$0xff] %v729_v21 }
 0x16e   : > { %743 = vst [vmem:[%s1543_s11 + $0x30] sm:$0xff] %v721_v54 }
 0x16f   : > { %744 = vst.msk [vmem:[%s1543_s11 + $0x38] sm:$0xff] %vm241_vm0, %v722_v45 }
 0x170   : > { %752 = vst.msk [vmem:[%s1543_s11 + $0x78] sm:$0xff] %vm241_vm0, %v730_v59 }
 0x172   : > { %v713_v37 = vpop.permute.xlu0 %712 }
 0x173   : > { %v693_v63 = vpop.permute.xlu1 %692  ;;  %v735_v11 = vadd.f32 %v713_v37, %v658_v13  ;;  %v736_v35 = vadd.f32 %v713_v37, %v659_v25 }
 0x174   : > { %v727_v44 = vadd.f32 %v693_v63, %v650_v12  ;;  %v728_v47 = vadd.f32 %v693_v63, %v651_v62 }
 0x175   : > { %757 = vst [vmem:[%s1543_s11 + $0xa0] sm:$0xff] %v735_v11 }
 0x176   : > { %749 = vst [vmem:[%s1543_s11 + $0x60] sm:$0xff] %v727_v44 }
 0x177   : > { %750 = vst.msk [vmem:[%s1543_s11 + $0x68] sm:$0xff] %vm241_vm0, %v728_v47 }
 0x178   : > { %758 = vst.msk [vmem:[%s1543_s11 + $0xa8] sm:$0xff] %vm241_vm0, %v736_v35 }
 0x17b   : > { %v708_v20 = vpop.permute.xlu1 %707 }
 0x17c   : > { %v733_v9 = vadd.f32 %v708_v20, %v656_v42  ;;  %v734_v57 = vadd.f32 %v708_v20, %v657_v23 }
 0x17e   : > { %755 = vst [vmem:[%s1543_s11 + $0x90] sm:$0xff] %v733_v9 }
 0x17f   : > { %756 = vst.msk [vmem:[%s1543_s11 + $0x98] sm:$0xff] %vm241_vm0, %v734_v57 }
 0x180   : > { %973 = shalt.err (!%p970_p3)
}
 0x181   : > { %s1011_s7 = smov 256   ;;  %s1012_s8 = smov 16  }
 0x182   : > { %879 = dma.vmem_to_hbm [thread:$0]  (%p1071_p5), %s774_s25, 2816, %s776_s16, %s760_s26, %s1011_s7, %s1011_s7, %s1012_s8  }
 0x183 PF: > { %p885_p4 = scmp.ge.s32.totalorder %s1008_s15, 2  ;;  %s790_s9 = sand.u32 1, %s996_s12  }
 0x184   : > { %s791_s10 = scalar_lea.sflag [#allocation3], %s790_s9 }
 0x185   : > { %p882_p7 = pnand %p885_p4, %p1075_p6 }
 0x187   : > { %p883_p8 = pneg %p882_p7 }
 0x189   : > { %991 = dma.done.wait (%p883_p8), %s791_s10, 2816  }
 0x18a   : > { %993 = vsyncadd (%p883_p8), %s791_s10, 4294964480  ;;  %p13_p9 = scmp.ge.s32.totalorder %s1058_s18, 4   ;;  %s1665_s12 = smov %s1000_s13 }
 0x18b   : > { %s1666_s13 = smov %s1004_s14  ;;  %s1667_s14 = smov %s1069_s21 }
 0x18c   : > { %s1668_s15 = smov %s1058_s18  ;;  %15 = sbr.rel (!%p13_p9) target bundleno = 3 (0x3), region = 73 }
 0x191   :  { %797 = vsyncpa [#allocation3], 1 }
 0x192   :  { %799 = vsyncpa [#allocation3 + $0x1], 1 }

</bundles_post_ra>
